<compile_context>
chip_gen: v6e
topology: v6e:2x2x1
jax: 0.10.0
libtpu: 0.0.40
codegen_flags: <defaults>
</compile_context>

<pallas_src>
import jax
import jax.numpy as jnp
from jax import lax
from jax.experimental import pallas as pl
from jax.experimental.pallas import tpu as pltpu


def _velocity_loss_kernel(x_ref, tgt_ref, m_ref, o_ref, d_carry, acc_num, acc_den):
    # x_ref, tgt_ref : (1, tT, D)  VMEM tiles of x / target
    # m_ref          : (1, tT, 1)  VMEM tile of padding_mask (any dtype)
    # o_ref          : (1, 1, 1)   per-batch loss, written only on the last T-tile
    # d_carry        : (1, 1, D)   f32 scratch: last row of (x - target) of prev tile
    # acc_num/acc_den: (1, 1, 1)   f32 scratch accumulators
    t_idx = pl.program_id(1)
    t_tiles = pl.num_programs(1)
    t_blk = x_ref.shape[1]

    # Accumulate in f32 regardless of input dtype.
    d = x_ref[...].astype(jnp.float32) - tgt_ref[...].astype(jnp.float32)  # (1,tT,D)

    @pl.when(t_idx == 0)
    def _init():
        acc_num[...] = jnp.zeros_like(acc_num)
        acc_den[...] = jnp.zeros_like(acc_den)
        # Velocity at global position 0 is undefined; seed the carry with row 0
        # so that row evaluates to exactly 0 (its weight is forced to 0 below).
        d_carry[...] = d[:, 0:1, :]

    # d_prev[i] = d[i-1]; row 0 comes from the previous T-tile (or the seed above).
    if t_blk > 1:
        d_prev = jnp.concatenate([d_carry[...], d[:, : t_blk - 1, :]], axis=1)
    else:
        d_prev = d_carry[...]
    vel_err = d - d_prev
    l2 = jnp.sqrt(jnp.sum(vel_err * vel_err, axis=-1, keepdims=True))      # (1,tT,1)

    # Mask cast happens in-kernel; global position 0 has no velocity entry.
    w = m_ref[...].astype(jnp.float32)                                     # (1,tT,1)
    gpos = t_idx * t_blk + lax.broadcasted_iota(jnp.int32, (1, t_blk, 1), 1)
    w = jnp.where(gpos >= 1, w, 0.0)

    acc_num[...] += jnp.sum(l2 * w, axis=1, keepdims=True)                 # (1,1,1)
    acc_den[...] += jnp.sum(w, axis=1, keepdims=True)

    # Carry the last row of d into the next T-tile (read above happened first).
    d_carry[...] = d[:, t_blk - 1: t_blk, :]

    @pl.when(t_idx == t_tiles - 1)
    def _finalize():
        # Single divide per batch row, only in the finalize epilogue.
        o_ref[...] = (acc_num[...] / acc_den[...]).astype(o_ref.dtype)


def velocity_loss(x, target, padding_mask):
    """Pallas equivalent of VelocityLoss.forward(x, target, {'padding_mask': mask}).

    x, target: (B, T, D); padding_mask: (B, T) (bool/int/float). Returns (B,).
    """
    assert x.shape == target.shape and x.ndim == 3
    B, T, D = x.shape
    assert padding_mask.shape == (B, T)
    itemsize = jnp.dtype(x.dtype).itemsize

    # ---- T-tile selection (memory-bound kernel) ----
    # ~1 MiB per input block; double-buffered x 2 inputs => ~4 MiB resident,
    # well inside v5e's 16 MiB scoped default and v7x's 64 MiB physical VMEM.
    budget_rows = max(1, (1 * 1024 * 1024) // max(1, D * itemsize))
    cand = min(512, budget_rows)
    if T <= max(cand, 128):
        t_tile, t_pad = T, T                       # full-T block is always legal
    else:
        t_tile = max(128, (cand // 128) * 128)     # multiple of 128: legal for any dtype
        t_pad = ((T + t_tile - 1) // t_tile) * t_tile

    mask3 = padding_mask.reshape(B, T, 1)          # lane dim == 1 == full dim (legal block)
    if t_pad != T:
        pad = t_pad - T
        x = jnp.pad(x, ((0, 0), (0, pad), (0, 0)))
        target = jnp.pad(target, ((0, 0), (0, pad), (0, 0)))
        mask3 = jnp.pad(mask3, ((0, 0), (0, pad), (0, 0)))   # zero weight in padding

    grid = (B, t_pad // t_tile)

    out = pl.pallas_call(
        _velocity_loss_kernel,
        out_shape=jax.ShapeDtypeStruct((B, 1, 1), x.dtype),
        grid_spec=pltpu.PrefetchScalarGridSpec(
            num_scalar_prefetch=0,
            grid=grid,
            in_specs=[
                pl.BlockSpec((1, t_tile, D), lambda b, t: (b, t, 0)),
                pl.BlockSpec((1, t_tile, D), lambda b, t: (b, t, 0)),
                pl.BlockSpec((1, t_tile, 1), lambda b, t: (b, t, 0)),
            ],
            out_specs=pl.BlockSpec((1, 1, 1), lambda b, t: (b, 0, 0)),
            scratch_shapes=[
                pltpu.VMEM((1, 1, D), jnp.float32),   # d_carry
                pltpu.VMEM((1, 1, 1), jnp.float32),   # acc_num
                pltpu.VMEM((1, 1, 1), jnp.float32),   # acc_den
            ],
        ),
        compiler_params=pltpu.CompilerParams(
            dimension_semantics=("parallel", "arbitrary"),
            vmem_limit_bytes=48 * 1024 * 1024,
        ),
        cost_estimate=pl.CostEstimate(
            flops=5 * B * T * D,
            transcendentals=B * T,
            bytes_accessed=2 * B * T * D * itemsize
            + B * T * jnp.dtype(padding_mask.dtype).itemsize
            + B * itemsize,
        ),
    )(x, target, mask3)
    return out[:, 0, 0]


def _reference(x, target, padding_mask):
    # Pure-JAX mirror of VelocityLoss.forward.
    vel_gt = target[:, 1:, :] - target[:, :-1, :]
    vel_pred = x[:, 1:, :] - x[:, :-1, :]
    l2 = jnp.sqrt(jnp.sum((vel_pred - vel_gt) ** 2, axis=-1))   # (B, T-1)
    m = padding_mask[:, 1:].astype(jnp.float32)
    return jnp.sum(l2 * m, axis=1) / jnp.sum(m, axis=1)


if __name__ == "__main__":
    key = jax.random.PRNGKey(0)

    # ---- small test (module-implied shapes): B=2, T=8, D=32 ----
    B, T, D = 2, 8, 32
    kx, kt, k2 = jax.random.split(key, 3)
    x = jax.random.normal(kx, (B, T, D), dtype=jnp.float32)
    target = jax.random.normal(kt, (B, T, D), dtype=jnp.float32)
    padding_mask = jnp.stack(
        [
            jnp.concatenate([jnp.ones((6,), jnp.float32), jnp.zeros((2,), jnp.float32)]),
            jnp.ones((T,), jnp.float32),
        ],
        axis=0,
    )  # (B, T): 1.0 for valid positions, 0.0 for padding

    loss = jax.block_until_ready(velocity_loss(x, target, padding_mask))
    ref = _reference(x, target, padding_mask)
    assert loss.shape == (B,)
    assert jnp.allclose(loss, ref, rtol=1e-5, atol=1e-5), (loss, ref)

    # ---- larger test exercising the tiled / carry / padded path ----
    B2, T2, D2 = 2, 640, 256
    kx2, kt2 = jax.random.split(k2)
    x2 = jax.random.normal(kx2, (B2, T2, D2), dtype=jnp.float32)
    t2 = jax.random.normal(kt2, (B2, T2, D2), dtype=jnp.float32)
    valid = jnp.arange(T2)[None, :] < jnp.array([500, 640])[:, None]
    mask2 = valid.astype(jnp.float32)

    loss2 = jax.block_until_ready(velocity_loss(x2, t2, mask2))
    ref2 = _reference(x2, t2, mask2)
    assert loss2.shape == (B2,)
    assert jnp.allclose(loss2, ref2, rtol=1e-5, atol=1e-4), (loss2, ref2)

    print("KERNEL_OK")
</pallas_src>

<mosaic_0001>
module attributes {stable_mosaic.version = 11 : i64} {
  func.func @_velocity_loss_kernel(%arg0: i32, %arg1: i32, %arg2: memref<1x8x32xf32, #tpu.memory_space<vmem>>, %arg3: memref<1x8x32xf32, #tpu.memory_space<vmem>>, %arg4: memref<1x8x1xf32, #tpu.memory_space<vmem>>, %arg5: memref<1x1x1xf32, #tpu.memory_space<vmem>>, %arg6: memref<1x1x32xf32, #tpu.memory_space<vmem>>, %arg7: memref<1x1x1xf32, #tpu.memory_space<vmem>>, %arg8: memref<1x1x1xf32, #tpu.memory_space<vmem>>) attributes {dimension_semantics = [#tpu.dimension_semantics<parallel>, #tpu.dimension_semantics<arbitrary>], iteration_bounds = array<i64: 2, 1>, scalar_prefetch = 0 : i64, scratch_operands = 3 : i64, tpu.core_type = #tpu.core_type<tc>, window_params = [{transform_indices = @transform_0, window_bounds = array<i64: 1, 8, 32>}, {transform_indices = @transform_1, window_bounds = array<i64: 1, 8, 32>}, {transform_indices = @transform_2, window_bounds = array<i64: 1, 8, 1>}, {transform_indices = @transform_3, window_bounds = array<i64: 1, 1, 1>}]} {
    %c0 = arith.constant 0 : index
    %c0_0 = arith.constant 0 : index
    %c0_1 = arith.constant 0 : index
    %0 = vector.load %arg2[%c0, %c0_0, %c0_1] : memref<1x8x32xf32, #tpu.memory_space<vmem>>, vector<1x8x32xf32>
    %c0_2 = arith.constant 0 : index
    %c0_3 = arith.constant 0 : index
    %c0_4 = arith.constant 0 : index
    %1 = vector.load %arg3[%c0_2, %c0_3, %c0_4] : memref<1x8x32xf32, #tpu.memory_space<vmem>>, vector<1x8x32xf32>
    %2 = arith.subf %0, %1 : vector<1x8x32xf32>
    %c0_i32 = arith.constant 0 : i32
    %3 = arith.cmpi eq, %arg1, %c0_i32 : i32
    %4 = arith.extui %3 : i1 to i32
    %c0_i32_5 = arith.constant 0 : i32
    %5 = arith.cmpi ne, %4, %c0_i32_5 : i32
    scf.if %5 {
      %cst_32 = arith.constant 0.000000e+00 : f32
      %39 = vector.broadcast %cst_32 : f32 to vector<1x1x1xf32>
      %c0_33 = arith.constant 0 : index
      %c0_34 = arith.constant 0 : index
      %c0_35 = arith.constant 0 : index
      %40 = vector.load %arg7[%c0_33, %c0_34, %c0_35] : memref<1x1x1xf32, #tpu.memory_space<vmem>>, vector<1x1x1xf32>
      tpu.vector_store %arg7[%c0_33, %c0_34, %c0_35], %39 {strides = array<i32>} : memref<1x1x1xf32, #tpu.memory_space<vmem>>, vector<1x1x1xf32>,
      %cst_36 = arith.constant 0.000000e+00 : f32
      %41 = vector.broadcast %cst_36 : f32 to vector<1x1x1xf32>
      %c0_37 = arith.constant 0 : index
      %c0_38 = arith.constant 0 : index
      %c0_39 = arith.constant 0 : index
      %42 = vector.load %arg8[%c0_37, %c0_38, %c0_39] : memref<1x1x1xf32, #tpu.memory_space<vmem>>, vector<1x1x1xf32>
      tpu.vector_store %arg8[%c0_37, %c0_38, %c0_39], %41 {strides = array<i32>} : memref<1x1x1xf32, #tpu.memory_space<vmem>>, vector<1x1x1xf32>,
      %43 = vector.extract_strided_slice %2 {offsets = [0, 0, 0], sizes = [1, 1, 32], strides = [1, 1, 1]} : vector<1x8x32xf32> to vector<1x1x32xf32>
      %c0_40 = arith.constant 0 : index
      %c0_41 = arith.constant 0 : index
      %c0_42 = arith.constant 0 : index
      %44 = vector.load %arg6[%c0_40, %c0_41, %c0_42] : memref<1x1x32xf32, #tpu.memory_space<vmem>>, vector<1x1x32xf32>
      tpu.vector_store %arg6[%c0_40, %c0_41, %c0_42], %43 {strides = array<i32>} : memref<1x1x32xf32, #tpu.memory_space<vmem>>, vector<1x1x32xf32>,
    } else {
    }
    %c0_6 = arith.constant 0 : index
    %c0_7 = arith.constant 0 : index
    %c0_8 = arith.constant 0 : index
    %6 = vector.load %arg6[%c0_6, %c0_7, %c0_8] : memref<1x1x32xf32, #tpu.memory_space<vmem>>, vector<1x1x32xf32>
    %7 = vector.extract_strided_slice %2 {offsets = [0, 0, 0], sizes = [1, 7, 32], strides = [1, 1, 1]} : vector<1x8x32xf32> to vector<1x7x32xf32>
    %8 = tpu.concatenate %6, %7 in 1 : vector<1x1x32xf32>, vector<1x7x32xf32> -> vector<1x8x32xf32>
    %9 = arith.subf %2, %8 : vector<1x8x32xf32>
    %10 = arith.mulf %9, %9 : vector<1x8x32xf32>
    %cst = arith.constant dense<0.000000e+00> : vector<1x8xf32>
    %11 = vector.multi_reduction <add>, %10, %cst [2] : vector<1x8x32xf32> to vector<1x8xf32>
    %12 = vector.shape_cast %11 : vector<1x8xf32> to vector<1x8x1xf32>
    %13 = math.sqrt %12 : vector<1x8x1xf32>
    %c0_9 = arith.constant 0 : index
    %c0_10 = arith.constant 0 : index
    %c0_11 = arith.constant 0 : index
    %14 = vector.load %arg4[%c0_9, %c0_10, %c0_11] : memref<1x8x1xf32, #tpu.memory_space<vmem>>, vector<1x8x1xf32>
    %c8_i32 = arith.constant 8 : i32
    %15 = arith.muli %arg1, %c8_i32 : i32
    %16 = tpu.iota {dimensions = array<i32: 1>} : vector<1x8x1xi32>
    %17 = vector.broadcast %15 : i32 to vector<1x8x1xi32>
    %18 = arith.addi %17, %16 : vector<1x8x1xi32>
    %c1_i32 = arith.constant 1 : i32
    %19 = vector.broadcast %c1_i32 : i32 to vector<1x8x1xi32>
    %20 = arith.cmpi sge, %18, %19 : vector<1x8x1xi32>
    %cst_12 = arith.constant 0.000000e+00 : f32
    %21 = vector.broadcast %cst_12 : f32 to vector<1x8x1xf32>
    %22 = arith.select %20, %14, %21 : vector<1x8x1xi1>, vector<1x8x1xf32>
    %c0_13 = arith.constant 0 : index
    %c0_14 = arith.constant 0 : index
    %c0_15 = arith.constant 0 : index
    %23 = vector.load %arg7[%c0_13, %c0_14, %c0_15] : memref<1x1x1xf32, #tpu.memory_space<vmem>>, vector<1x1x1xf32>
    %24 = arith.mulf %13, %22 : vector<1x8x1xf32>
    %cst_16 = arith.constant dense<0.000000e+00> : vector<1x1xf32>
    %25 = vector.multi_reduction <add>, %24, %cst_16 [1] : vector<1x8x1xf32> to vector<1x1xf32>
    %26 = vector.shape_cast %25 : vector<1x1xf32> to vector<1x1x1xf32>
    %27 = arith.addf %23, %26 : vector<1x1x1xf32>
    %c0_17 = arith.constant 0 : index
    %c0_18 = arith.constant 0 : index
    %c0_19 = arith.constant 0 : index
    %28 = vector.load %arg7[%c0_17, %c0_18, %c0_19] : memref<1x1x1xf32, #tpu.memory_space<vmem>>, vector<1x1x1xf32>
    tpu.vector_store %arg7[%c0_17, %c0_18, %c0_19], %27 {strides = array<i32>} : memref<1x1x1xf32, #tpu.memory_space<vmem>>, vector<1x1x1xf32>,
    %c0_20 = arith.constant 0 : index
    %c0_21 = arith.constant 0 : index
    %c0_22 = arith.constant 0 : index
    %29 = vector.load %arg8[%c0_20, %c0_21, %c0_22] : memref<1x1x1xf32, #tpu.memory_space<vmem>>, vector<1x1x1xf32>
    %cst_23 = arith.constant dense<0.000000e+00> : vector<1x1xf32>
    %30 = vector.multi_reduction <add>, %22, %cst_23 [1] : vector<1x8x1xf32> to vector<1x1xf32>
    %31 = vector.shape_cast %30 : vector<1x1xf32> to vector<1x1x1xf32>
    %32 = arith.addf %29, %31 : vector<1x1x1xf32>
    %c0_24 = arith.constant 0 : index
    %c0_25 = arith.constant 0 : index
    %c0_26 = arith.constant 0 : index
    %33 = vector.load %arg8[%c0_24, %c0_25, %c0_26] : memref<1x1x1xf32, #tpu.memory_space<vmem>>, vector<1x1x1xf32>
    tpu.vector_store %arg8[%c0_24, %c0_25, %c0_26], %32 {strides = array<i32>} : memref<1x1x1xf32, #tpu.memory_space<vmem>>, vector<1x1x1xf32>,
    %34 = vector.extract_strided_slice %2 {offsets = [0, 7, 0], sizes = [1, 1, 32], strides = [1, 1, 1]} : vector<1x8x32xf32> to vector<1x1x32xf32>
    %c0_27 = arith.constant 0 : index
    %c0_28 = arith.constant 0 : index
    %c0_29 = arith.constant 0 : index
    %35 = vector.load %arg6[%c0_27, %c0_28, %c0_29] : memref<1x1x32xf32, #tpu.memory_space<vmem>>, vector<1x1x32xf32>
    tpu.vector_store %arg6[%c0_27, %c0_28, %c0_29], %34 {strides = array<i32>} : memref<1x1x32xf32, #tpu.memory_space<vmem>>, vector<1x1x32xf32>,
    %c0_i32_30 = arith.constant 0 : i32
    %36 = arith.cmpi eq, %arg1, %c0_i32_30 : i32
    %37 = arith.extui %36 : i1 to i32
    %c0_i32_31 = arith.constant 0 : i32
    %38 = arith.cmpi ne, %37, %c0_i32_31 : i32
    scf.if %38 {
      %c0_32 = arith.constant 0 : index
      %c0_33 = arith.constant 0 : index
      %c0_34 = arith.constant 0 : index
      %39 = vector.load %arg7[%c0_32, %c0_33, %c0_34] : memref<1x1x1xf32, #tpu.memory_space<vmem>>, vector<1x1x1xf32>
      %c0_35 = arith.constant 0 : index
      %c0_36 = arith.constant 0 : index
      %c0_37 = arith.constant 0 : index
      %40 = vector.load %arg8[%c0_35, %c0_36, %c0_37] : memref<1x1x1xf32, #tpu.memory_space<vmem>>, vector<1x1x1xf32>
      %41 = arith.divf %39, %40 : vector<1x1x1xf32>
      %c0_38 = arith.constant 0 : index
      %c0_39 = arith.constant 0 : index
      %c0_40 = arith.constant 0 : index
      %42 = vector.load %arg5[%c0_38, %c0_39, %c0_40] : memref<1x1x1xf32, #tpu.memory_space<vmem>>, vector<1x1x1xf32>
      tpu.vector_store %arg5[%c0_38, %c0_39, %c0_40], %41 {strides = array<i32>} : memref<1x1x1xf32, #tpu.memory_space<vmem>>, vector<1x1x1xf32>,
    } else {
    }
    return
  }
  func.func @transform_0(%arg0: i32, %arg1: i32) -> (i32, i32, i32) {
    %c0_i32 = arith.constant 0 : i32
    %c0_i32_0 = arith.constant 0 : i32
    return %arg0, %arg1, %c0_i32 : i32, i32, i32
  }
  func.func @transform_1(%arg0: i32, %arg1: i32) -> (i32, i32, i32) {
    %c0_i32 = arith.constant 0 : i32
    %c0_i32_0 = arith.constant 0 : i32
    return %arg0, %arg1, %c0_i32 : i32, i32, i32
  }
  func.func @transform_2(%arg0: i32, %arg1: i32) -> (i32, i32, i32) {
    %c0_i32 = arith.constant 0 : i32
    %c0_i32_0 = arith.constant 0 : i32
    return %arg0, %arg1, %c0_i32 : i32, i32, i32
  }
  func.func @transform_3(%arg0: i32, %arg1: i32) -> (i32, i32, i32) {
    %c0_i32 = arith.constant 0 : i32
    %c0_i32_0 = arith.constant 0 : i32
    %c0_i32_1 = arith.constant 0 : i32
    return %arg0, %c0_i32, %c0_i32_0 : i32, i32, i32
  }
}

</mosaic_0001>

<bundles_post_ra>
// kernel: tpu_custom_call.1
= control target key start
LH: loop header
LB: loop body
LE: loop exit
PB: predicated region body
PF: predicated region fallthrough
CT: control target
= control target key end

     0   :  { %8 = vsyncpa [#allocation6], 0  ;;  %s717_s0 = inlined_call_operand.vmem [shape: f32[2,8,32], index: 0, kind: input, shape index: {}]   ;;  %s718_s1 = inlined_call_operand.hbm [shape: f32[2,8,32], index: 1, kind: input, shape index: {}]   ;;  %s719_s2 = inlined_call_operand.vmem [shape: f32[2,8,1], index: 2, kind: input, shape index: {}]   ;;  %s720_s3 = inlined_call_operand.vmem [shape: f32[2,1,1], index: 3, kind: output, shape index: {}]  }
   0x1   :  { %10 = vsyncpa [#allocation6 + $0x1], 0  ;;  %s600_s12 = smov 0   ;;  %s602_s13 = smov 0  }
   0x2   :  { %s604_s14 = smov 0   ;;  %s606_s15 = smov 0  }
   0x3   :  { %s608_s16 = smov 0   ;;  %s610_s17 = smov 0  }
   0x4 LB: > { %s425_s18 = sadd.s32 4294967295, %s576_s17   ;;  %s28_s19 = sadd.s32 1, %s572_s16  ;;  %s576_s17 = sphi %s610_s17, %s16_s17   ;;  %s572_s16 = sphi %s608_s16, %s728_s16   ;;  %s568_s15 = sphi %s606_s15, %s727_s15   ;;  %s564_s14 = sphi %s604_s14, %s726_s14   ;;  %s560_s13 = sphi %s602_s13, %s725_s13   ;;  %s556_s12 = sphi %s600_s12, %s724_s12  }
   0x5   : > { %p30_p0 = scmp.ge.s32.totalorder %s28_s19, 2  ;;  %s65_s20 = sadd.s32 1, %s564_s14 }
   0x6   : > { %p72_p1 = scmp.ne.s32.totalorder %s564_s14, %s560_s13  ;;  %p73_p2 = scmp.eq.s32.totalorder %s576_s17, 0 }
   0x7   : > { %s730_s19 = smov (%p30_p0, %s28_s19), 0  ;;  %p78_p4 = scmp.ne.s32.totalorder %s560_s13, %s556_s12 }
   0x8   : > { %p636_p3 = por %p73_p2, %p72_p1  ;;  %s60_s22 = ssub.s32 %s572_s16, %s730_s19 }
   0x9   : > { %p79_p5 = scmp.eq.s32.totalorder %s425_s18, 0  ;;  %p63_p6 = scmp.eq.s32.totalorder %s60_s22, 0 }
   0xa   : > { %p444_p8 = scmp.lt.s32.totalorder %s576_s17, 2  ;;  %s166_s25 = sand.u32 1, %s564_s14  }
   0xb   : > { %p643_p7 = por %p79_p5, %p78_p4  ;;  %s430_s26 = sshll.u32 %s572_s16, 7 }
   0xc   : > { %s649_s24 = scalar_select %p63_p6, %s564_s14, %s65_s20  }
   0xd   : > { %s429_s27 = sshll.u32 %s166_s25, 3  ;;  %s176_s30 = scalar_lea.hbm %s718_s1, %s430_s26 }
   0xe   : > { %s170_s4 = scalar_lea.vmem [#allocation5], %s429_s27  ;;  %p658_p9 = pnand %p444_p8, %p636_p3 }
   0xf   : > { %s178_s5 = sshll.u32 %s170_s4, 4  ;;  %p431_p10 = scmp.ge.s32.totalorder %s576_s17, 1  ;;  %s179_s5 = int_to_ptr.vmem [resolvable:$true] %s178_s5 }
  0x10   : > { %p193_p11 = scmp.lt.s32.totalorder %s576_s17, 3  ;;  %s167_s7 = scalar_lea.sflag [#allocation6], %s166_s25 }
  0x11   : > { %p500_p12 = pneg %p658_p9  ;;  %s511_s8 = scalar_lea.vmem %s179_s5, 128 }
  0x12   : > { %p512_p13 = scmp.ne.s32.totalorder %s179_s5, %s511_s8  ;;  %s578_s9 = smov [#allocation5]  }
  0x13   : > { %s516_s10 = sshll.u32 %s578_s9, 4  ;;  %s517_s10 = int_to_ptr.vmem [resolvable:$false] %s516_s10 }
  0x14   : > { %p514_p0 = pnand %p512_p13, %p500_p12  ;;  %s518_s11 = scalar_lea.vmem %s517_s10, 256 }
  0x15   : > { %p519_p2 = scmp.lt.s32.totalorder %s179_s5, %s517_s10  ;;  %p520_p3 = scmp.lt.s32.totalorder %s518_s11, %s511_s8 }
  0x16   : > { %p515_p1 = pneg %p514_p0 }
  0x17   : > { %p521_p4 = por %p520_p3, %p519_p2 }
  0x19   : > { %p522_p5 = pnand %p521_p4, %p515_p1 }
  0x1b   : > { %525 = shalt.err (!%p522_p5)
}
  0x1c   : > { %443 = dma.hbm_to_vmem [thread:$0]  (!%p658_p9), %s176_s30, 128, %s179_s5, %s167_s7  }
  0x1d   : > { %p194_p6 = pnand %p431_p10, %p193_p11 }
  0x1e   : > { %s199_s12 = sand.u32 (!%p194_p6), 1, %s560_s13  }
  0x1f   : > { %197 = sbr.rel (%p194_p6) target bundleno = 243 (0xf3), region = 32  ;;  %s432_s18 = sshll.u32 (!%p194_p6), %s199_s12, 3 }
  0x20   : > { %s200_s20 = scalar_lea.sflag (!%p194_p6), [#allocation6], %s199_s12  ;;  %s203_s21 = scalar_lea.vmem (!%p194_p6), [#allocation5], %s432_s18 }
  0x24   : > { %551 = dma.done.wait (%p643_p7), %s200_s20, 128  }
  0x25   : > { %553 = vsyncadd (%p643_p7), %s200_s20, 4294967168  ;;  %p238_p8 = scmp.lt.s32.totalorder %s568_s15, 1  ;;  %vm262_vm0 = vcmask 0   ;;  %v579_v0 = vmov 0.0   ;;  %v256_v2 = vld [vmem:[%s203_s21] sm:$0xff]  ;;  %vm265_vm1 = vcmask 253952  }
  0x26   : > { %263 = vst.msk [vmem:[#allocation3] sm:$0x1] %vm262_vm0, %v579_v0  ;;  %264 = vst.msk [vmem:[#allocation4] sm:$0x1] %vm262_vm0, %v579_v0  ;;  %vm271_vm2 = vcmask 1040384   ;;  %vm317_vm3 = vcmask 261127  }
  0x27   : > { %s732_s15 = smov (!%p238_p8, %s568_s15), 1  ;;  %vm275_vm4 = vcmask 261120   ;;  %vm296_vm5 = vcmask 7168  }
  0x28   : > { %s433_s22 = sshll.u32 %s732_s15, 3  ;;  %s254_s5 = scalar_lea.vmem %s720_s3, %s732_s15 }
  0x29   : > { %s244_s27 = scalar_lea.vmem %s717_s0, %s433_s22  ;;  %s251_s29 = scalar_lea.vmem %s719_s2, %s433_s22 }
  0x2a   : > { %v255_v1 = vld [vmem:[%s244_s27] sm:$0xff] }
  0x2b   : > { %v257_v3 = vsub.f32 %v255_v1, %v256_v2  ;;  %v435_v10 = vld [vmem:[%s251_s29] sm:$0xfe] }
  0x2c   : > { %v308_v11 = vsel %vm296_vm5, %v435_v10, 0.0 }
  0x2d   : > { %266 = vst.msk [vmem:[#allocation2] sm:$0x1] %vm265_vm1, %v257_v3  ;;  %v269_v4 = vrot.slane %v257_v3, 7  ;;  %v309_v12 = vrot.slane %v308_v11, 4  ;;  %v307_v18 = vld [vmem:[#allocation4] sm:$0x1] }
  0x2e   : > { %v294_v34 = vld [vmem:[#allocation3] sm:$0x1] }
  0x2f   : > { %v310_v13 = vadd.f32 %v309_v12, %v308_v11 }
  0x31   : > { %v311_v14 = vrot.slane %v310_v13, 2 }
  0x33   : > { %v312_v15 = vadd.f32 %v311_v14, %v310_v13 }
  0x34   : > { %v267_v5 = vld [vmem:[#allocation2] sm:$0x1] }
  0x35   : > { %v272_v6 = vsel %vm271_vm2, %v267_v5, %v269_v4  ;;  %318 = vst.msk [vmem:[#allocation2 - $0x7] sm:$0x80] %vm317_vm3, %v257_v3  ;;  %v313_v16 = vrot.slane %v312_v15, 1 }
  0x36   : > { %v273_v7 = vsub.f32 %v257_v3, %v272_v6 }
  0x37   : > { %v314_v17 = vadd.f32 %v313_v16, %v312_v15 }
  0x38   : > { %v274_v8 = vmul.f32 %v273_v7, %v273_v7 }
  0x39   : > { %v315_v19 = vadd.f32 %v314_v17, %v307_v18 }
  0x3a   : > { %v276_v9 = vsel %vm275_vm4, %v274_v8, 0.0 }
  0x3b   : > { %277 = vadd.xlane.f32.xlu0 %v276_v9  ;;  %316 = vst.msk [vmem:[#allocation4] sm:$0x1] %vm262_vm0, %v315_v19 }
  0x42   : > { %v323_v30 = vld [vmem:[#allocation4] sm:$0x1] }
  0xc4   : > { %v278_v20 = vpop.xlane.xlu0 %277 }
  0xc5   : > { %494 = vrsqrt.f32 %v278_v20  ;;  %vm281_vm6 = vcmp.eq.f32.partialorder %v278_v20, inf  ;;  %v284_v23 = vand.u32 2147483648, %v278_v20  ;;  %vm283_vm7 = vcmp.eq.f32.partialorder %v278_v20, 0.0 }
  0xc6   : > { %496 = vrcp.f32 %v323_v30 }
  0xd2   : > { %v495_v21 = vpop.eup %494 }
  0xd3   : > { %v280_v22 = vmul.f32 %v495_v21, %v278_v20  ;;  %v497_v37 = vpop.eup %496 }
  0xd5   : > { %v282_v24 = vsel %vm281_vm6, %v278_v20, %v280_v22 }
  0xd6   : > { %v285_v25 = vsel %vm283_vm7, %v284_v23, %v282_v24 }
  0xd7   : > { %v295_v26 = vmul.f32 %v435_v10, %v285_v25 }
  0xd9   : > { %v297_v27 = vsel %vm296_vm5, %v295_v26, 0.0 }
  0xda   : > { %v298_v28 = vrot.slane %v297_v27, 4 }
  0xdc   : > { %v299_v29 = vadd.f32 %v298_v28, %v297_v27 }
  0xde   : > { %v300_v31 = vrot.slane %v299_v29, 2 }
  0xe0   : > { %v301_v32 = vadd.f32 %v300_v31, %v299_v29 }
  0xe2   : > { %v302_v33 = vrot.slane %v301_v32, 1 }
  0xe4   : > { %v303_v35 = vadd.f32 %v302_v33, %v301_v32 }
  0xe6   : > { %v304_v36 = vadd.f32 %v303_v35, %v294_v34 }
  0xe8   : > { %306 = vst.msk [vmem:[#allocation3] sm:$0x1] %vm262_vm0, %v304_v36 }
  0xef   : > { %v322_v38 = vld [vmem:[#allocation3] sm:$0x1] }
  0xf0   : > { %v325_v39 = vmul.f32 %v497_v37, %v322_v38 }
  0xf2   : > { %326 = vst.msk [vmem:[%s254_s5] sm:$0x1] %vm262_vm0, %v325_v39 }
  0xf3 PF: > { %s16_s17 = sadd.s32 1, %s576_s17   ;;  %s724_s12 = smov %s560_s13 }
  0xf4   : > { %p13_p7 = scmp.ge.s32.totalorder %s16_s17, 4   ;;  %s725_s13 = smov %s564_s14 }
  0xf5   : > { %s726_s14 = smov %s649_s24  ;;  %s727_s15 = smov %s572_s16 }
  0xf6   : > { %s728_s16 = smov %s730_s19  ;;  %15 = sbr.rel (!%p13_p7) target bundleno = 4 (0x4), region = 86 }
  0xfb   :  { %344 = vsyncpa [#allocation6], 1 }
  0xfc   :  { %346 = vsyncpa [#allocation6 + $0x1], 1 }

</bundles_post_ra>
